<compile_context>
chip_gen: v5e
topology: v5e:2x2
jax: 0.10.0
libtpu: 0.0.40
codegen_flags: <defaults>
</compile_context>

<pallas_src>
import functools

import jax
import jax.numpy as jnp
from jax.experimental import pallas as pl
from jax.experimental.pallas import tpu as pltpu


def _locked_dropout_kernel(bits_ref, x_ref, o_ref, *, thresh: int, scale: float):
    """Apply the locked dropout mask to one (TILE_B, TILE_T, H) tile of x.

    bits_ref : VMEM (TILE_B, 1, H) uint32 -- random bits for these batch rows
               (same block delivered for every T tile -> mask locked across T)
    x_ref    : VMEM (TILE_B, TILE_T, H)
    o_ref    : VMEM (TILE_B, TILE_T, H)
    """
    # Bernoulli(keep_prob) via integer threshold on raw bits, scaled by
    # 1/keep_prob (inverted dropout).  Mask stays in x's native dtype
    # (matches PyTorch's in-dtype mask division).
    keep = bits_ref[...] < jnp.uint32(thresh)                 # (TILE_B, 1, H) bool
    mask = jnp.where(keep, scale, 0.0).astype(x_ref.dtype)    # (TILE_B, 1, H)
    # Broadcast over the locked (T) axis and apply.
    o_ref[...] = x_ref[...] * mask


def locked_dropout(x, dropout: float, key, training: bool = True, *,
                   donate_x: bool = False):
    """Pallas implementation of LockedDropout.forward.

    x   : (B, T, H) array; mask of shape (B, 1, H) is shared across axis 1.
    key : jax PRNG key used to draw the mask bits (fresh key per step).
    donate_x : alias x onto the output (caller must not reuse x afterwards).
    """
    if not training or dropout == 0.0:
        return x  # eval mode: identity, same as the PyTorch module.

    B, T, H = x.shape
    keep_prob = 1.0 - float(dropout)
    # uint32 threshold such that P(bits < thresh) == keep_prob.
    # (Clamped to 2^32-1 when keep_prob ~ 1: biases keep prob by ~2^-32,
    #  which is negligible.)
    thresh = min(int(round(keep_prob * float(1 << 32))), (1 << 32) - 1)
    scale = 1.0 / keep_prob

    # One (B, 1, H) draw of raw bits -> the mask is locked across the T axis
    # by construction (every T tile of a batch row reads the same bits block).
    bits = jax.random.bits(key, (B, 1, H), dtype=jnp.uint32)

    # ---- Tile sizing: ~4 MiB per x/out buffer, dtype-aligned sublanes. ----
    itemsize = jnp.dtype(x.dtype).itemsize
    # Sublane packing per vreg row-group: f32 -> 8, bf16 -> 16, int8/fp8 -> 32.
    sublane = {4: 8, 2: 16, 1: 32}.get(itemsize, 8)

    target_tile_bytes = 4 * 1024 * 1024          # per buffer
    row_bytes = H * itemsize                     # one (1, H) row of x

    rows = max(1, target_tile_bytes // max(row_bytes, 1))
    tile_t = T if rows >= T else max(sublane, (rows // sublane) * sublane)
    if tile_t >= T:
        tile_t = T
        # Whole batch row fits in one tile: tile over the batch axis too so
        # each grid step still moves up to ~target_tile_bytes.
        batch_row_bytes = T * row_bytes
        tile_b = min(B, max(1, target_tile_bytes // max(batch_row_bytes, 1)))
    else:
        tile_b = 1

    grid = (pl.cdiv(B, tile_b), pl.cdiv(T, tile_t))

    kernel = functools.partial(_locked_dropout_kernel, thresh=thresh, scale=scale)

    extra_kwargs = {}
    if donate_x:
        # x is positional input #1 (after bits); alias it onto the output.
        extra_kwargs["input_output_aliases"] = {1: 0}

    return pl.pallas_call(
        kernel,
        out_shape=jax.ShapeDtypeStruct(x.shape, x.dtype),
        grid=grid,
        in_specs=[
            # (TILE_B, 1, H) bits block; same block for every T tile of a
            # batch-row group -> locked mask. Last two block dims equal the
            # full array dims, so this is always a legal, minimal DMA.
            pl.BlockSpec((tile_b, 1, H), lambda bi, ti: (bi, 0, 0)),
            # (TILE_B, TILE_T, H) tile of x.
            pl.BlockSpec((tile_b, tile_t, H), lambda bi, ti: (bi, ti, 0)),
        ],
        out_specs=pl.BlockSpec((tile_b, tile_t, H), lambda bi, ti: (bi, ti, 0)),
        compiler_params=pltpu.CompilerParams(
            # Both axes are independent (no carried state) -> let v7x shard
            # them across its 2 TensorCores; neutral on v5e/v6e.
            dimension_semantics=("parallel", "parallel"),
            # Double-buffered in+out at 4 MiB tiles is ~16-17 MiB; 32 MiB is
            # comfortably above the v5e 16 MiB scoped default and well under
            # v7x's 64 MiB physical VMEM.
            vmem_limit_bytes=32 * 1024 * 1024,
        ),
        **extra_kwargs,
    )(bits, x)


if __name__ == "__main__":
    # Small shapes consistent with the module's (B, T, H) usage.
    B, T, H = 2, 8, 128
    dropout_p = 0.3

    root = jax.random.PRNGKey(0)
    kx, kmask = jax.random.split(root)
    x = jax.random.normal(kx, (B, T, H), dtype=jnp.float32)

    # Training mode: mask applied.
    y = jax.block_until_ready(locked_dropout(x, dropout_p, kmask, training=True))

    scale = 1.0 / (1.0 - dropout_p)

    # 1) every element is either 0 or x / (1 - p)
    ratio = jnp.where(x != 0, y / x, 0.0)
    ok_vals = jnp.all((jnp.abs(ratio) < 1e-6) | (jnp.abs(ratio - scale) < 1e-4))

    # 2) the mask is identical ("locked") across the T axis
    mask_est = jnp.where(x != 0, y / x, jnp.nan)
    locked = jnp.all(
        jnp.abs(jnp.nan_to_num(mask_est - mask_est[:, :1, :], nan=0.0)) < 1e-5
    )

    # 3) eval mode is identity
    y_eval = jax.block_until_ready(
        locked_dropout(x, dropout_p, kmask, training=False)
    )
    eval_ok = jnp.array_equal(y_eval, x)

    assert bool(ok_vals), "mask values are not {0, 1/(1-p)}"
    assert bool(locked), "mask is not locked across axis 1"
    assert bool(eval_ok), "eval mode is not identity"

    print("KERNEL_OK")
</pallas_src>

<mosaic_0001>
module attributes {stable_mosaic.version = 11 : i64} {
  func.func @_locked_dropout_kernel(%arg0: i32, %arg1: i32, %arg2: memref<2x1x128xi32, #tpu.memory_space<vmem>>, %arg3: memref<2x8x128xf32, #tpu.memory_space<vmem>>, %arg4: memref<2x8x128xf32, #tpu.memory_space<vmem>>) attributes {dimension_semantics = [#tpu.dimension_semantics<parallel>, #tpu.dimension_semantics<parallel>], iteration_bounds = array<i64: 1, 1>, scalar_prefetch = 0 : i64, scratch_operands = 0 : i64, tpu.core_type = #tpu.core_type<tc>, window_params = [{transform_indices = @transform_0, window_bounds = array<i64: 2, 1, 128>}, {transform_indices = @transform_1, window_bounds = array<i64: 2, 8, 128>}, {transform_indices = @transform_2, window_bounds = array<i64: 2, 8, 128>}]} {
    %c0 = arith.constant 0 : index
    %c0_0 = arith.constant 0 : index
    %c0_1 = arith.constant 0 : index
    %0 = vector.load %arg2[%c0, %c0_0, %c0_1] : memref<2x1x128xi32, #tpu.memory_space<vmem>>, vector<2x1x128xi32>
    %c-1288490189_i32 = arith.constant -1288490189 : i32
    %1 = vector.broadcast %c-1288490189_i32 : i32 to vector<2x1x128xi32>
    %2 = arith.cmpi ult, %0, %1 : vector<2x1x128xi32>
    %cst = arith.constant 1.42857146 : f32
    %cst_2 = arith.constant 0.000000e+00 : f32
    %3 = vector.broadcast %cst : f32 to vector<2x1x128xf32>
    %4 = vector.broadcast %cst_2 : f32 to vector<2x1x128xf32>
    %5 = arith.select %2, %3, %4 : vector<2x1x128xi1>, vector<2x1x128xf32>
    %c0_3 = arith.constant 0 : index
    %c0_4 = arith.constant 0 : index
    %c0_5 = arith.constant 0 : index
    %6 = vector.load %arg3[%c0_3, %c0_4, %c0_5] : memref<2x8x128xf32, #tpu.memory_space<vmem>>, vector<2x8x128xf32>
    %7 = vector.broadcast %5 : vector<2x1x128xf32> to vector<2x8x128xf32>
    %8 = arith.mulf %6, %7 : vector<2x8x128xf32>
    %c0_6 = arith.constant 0 : index
    %c0_7 = arith.constant 0 : index
    %c0_8 = arith.constant 0 : index
    %9 = vector.load %arg4[%c0_6, %c0_7, %c0_8] : memref<2x8x128xf32, #tpu.memory_space<vmem>>, vector<2x8x128xf32>
    tpu.vector_store %arg4[%c0_6, %c0_7, %c0_8], %8 {strides = array<i32>} : memref<2x8x128xf32, #tpu.memory_space<vmem>>, vector<2x8x128xf32>,
    return
  }
  func.func @transform_0(%arg0: i32, %arg1: i32) -> (i32, i32, i32) {
    %c0_i32 = arith.constant 0 : i32
    %c0_i32_0 = arith.constant 0 : i32
    %c0_i32_1 = arith.constant 0 : i32
    return %arg0, %c0_i32, %c0_i32_0 : i32, i32, i32
  }
  func.func @transform_1(%arg0: i32, %arg1: i32) -> (i32, i32, i32) {
    %c0_i32 = arith.constant 0 : i32
    %c0_i32_0 = arith.constant 0 : i32
    return %arg0, %arg1, %c0_i32 : i32, i32, i32
  }
  func.func @transform_2(%arg0: i32, %arg1: i32) -> (i32, i32, i32) {
    %c0_i32 = arith.constant 0 : i32
    %c0_i32_0 = arith.constant 0 : i32
    return %arg0, %arg1, %c0_i32 : i32, i32, i32
  }
}

</mosaic_0001>

<bundles_post_ra>
// kernel: tpu_custom_call.1
= control target key start
LH: loop header
LB: loop body
LE: loop exit
PB: predicated region body
PF: predicated region fallthrough
CT: control target
= control target key end

     0   :  { %7 = vsyncpa [#allocation3], 0  ;;  %s212_s0 = inlined_call_operand.hbm [shape: u32[2,1,128], index: 0, kind: input, shape index: {}]   ;;  %s213_s1 = inlined_call_operand.hbm [shape: f32[2,8,128], index: 1, kind: input, shape index: {}]   ;;  %s214_s2 = inlined_call_operand.hbm [shape: f32[2,8,128], index: 2, kind: output, shape index: {}]  }
   0x1   :  { %8 = vsyncpa [#allocation6], 0 }
   0x2   :  { %9 = vsyncpa [#allocation4], 0  ;;  %s14_s11 = sshll.u32 %s212_s0, 4  ;;  %s174_s12 = smov [#allocation2]   ;;  %s15_s11 = int_to_ptr.hbm [resolvable:$true] %s14_s11 }
   0x3   :  { %s16_s13 = sshll.u32 %s174_s12, 4  ;;  %s27_s16 = sshll.u32 %s213_s1, 4  ;;  %s17_s13 = int_to_ptr.vmem [resolvable:$true] %s16_s13  ;;  %s28_s16 = int_to_ptr.hbm [resolvable:$true] %s27_s16 }
   0x4   :  { %s175_s17 = smov 16   ;;  %s176_s18 = smov 1  }
   0x5   :  { %22 = dma.hbm_to_vmem [thread:$0]  %s15_s11, 32, %s17_s13, [#allocation3], %s175_s17, %s175_s17, %s176_s18  }
   0x6   :  { %s177_s19 = smov [#allocation5]   ;;  %s178_s21 = smov 128  }
   0x7   :  { %s29_s20 = sshll.u32 %s177_s19, 4  ;;  %s179_s22 = smov 8   ;;  %s30_s20 = int_to_ptr.vmem [resolvable:$true] %s29_s20 }
   0x8   :  { %35 = dma.hbm_to_vmem [thread:$0]  %s28_s16, 256, %s30_s20, [#allocation6], %s178_s21, %s178_s21, %s179_s22  }
   0x9   :  { %168 = dma.done.wait [#allocation3], 32  }
   0xa   :  { %169 = vsyncadd [#allocation3], 4294967264 }
   0xb   :  { %170 = dma.done.wait [#allocation6], 256  }
   0xc   :  { %171 = vsyncadd [#allocation6], 4294967040  ;;  %v44_v0 = vld [vmem:[#allocation2] sm:$0x1]  ;;  %v45_v1 = vld [vmem:[#allocation2 + $0x1] sm:$0x1] }
   0xd   :  { %v86_v2 = vxor.u32 2147483648, %v44_v0  ;;  %v87_v3 = vxor.u32 2147483648, %v45_v1  ;;  %v180_v4 = vmov 0.0   ;;  %v54_v6 = vld [vmem:[#allocation5] sm:$0xff]  ;;  %v55_v8 = vld [vmem:[#allocation5 + $0x8] sm:$0xff]  ;;  %s181_s0 = smov [#allocation7]  }
   0xe   :  { %s70_s1 = sshll.u32 %s181_s0, 4  ;;  %s72_s25 = sshll.u32 %s214_s2, 4  ;;  %s71_s1 = int_to_ptr.vmem [resolvable:$true] %s70_s1  ;;  %s73_s25 = int_to_ptr.hbm [resolvable:$true] %s72_s25 }
   0xf   :  { %vm48_vm0 = vcmp.lt.s32.totalorder %v86_v2, 858993459  ;;  %vm51_vm1 = vcmp.lt.s32.totalorder %v87_v3, 858993459 }
  0x10   :  { %v52_v5 = vsel %vm48_vm0, 1.4285715, %v180_v4  ;;  %v53_v7 = vsel %vm51_vm1, 1.4285715, %v180_v4 }
  0x11   :  { %v58_v9 = vperm.slane %v52_v5, 0  ;;  %v59_v10 = vperm.slane %v53_v7, 0 }
  0x13   :  { %v62_v11 = vmul.f32 %v58_v9, %v54_v6  ;;  %v63_v12 = vmul.f32 %v59_v10, %v55_v8 }
  0x15   :  { %64 = vst [vmem:[#allocation7] sm:$0xff] %v62_v11 }
  0x16   :  { %65 = vst [vmem:[#allocation7 + $0x8] sm:$0xff] %v63_v12 }
  0x17   :  { %78 = dma.vmem_to_hbm [thread:$0]  %s71_s1, 256, %s73_s25, [#allocation4], %s178_s21, %s178_s21, %s179_s22  }
  0x18   :  { %172 = dma.done.wait [#allocation4], 256  }
  0x19   :  { %173 = vsyncadd [#allocation4], 4294967040 }
  0x1a   :  { %83 = vsyncpa [#allocation3], 1 }
  0x1b   :  { %84 = vsyncpa [#allocation6], 1 }
  0x1c   :  { %85 = vsyncpa [#allocation4], 1 }

</bundles_post_ra>
